<compile_context>
chip_gen: v6e
topology: v6e:2x2x1
jax: 0.10.0
libtpu: 0.0.40
codegen_flags: <defaults>
</compile_context>

<pallas_src>
import functools

import jax
import jax.numpy as jnp
import numpy as np
from jax.experimental import pallas as pl
from jax.experimental.pallas import tpu as pltpu

LN_EPS = 1e-5


def _round_up(a, b):
    return ((a + b - 1) // b) * b


def prenorm_kernel(x_ref, gb_ref, w_ref, bias_ref, o_ref, *, inv_d):
    """Fused LayerNorm(x) @ W + bias for one (token, H) tile.

    x_ref:    (TM, Dp)   tile of tokens (D lane-padded with zeros)
    gb_ref:   (2, Dp)    row 0 = LN gamma, row 1 = LN beta (zero in padded lanes)
    w_ref:    (Dp, TN)   fn (Linear) weight tile, bf16, zero in padded rows/cols
    bias_ref: (1, TN)    fn (Linear) bias tile (f32)
    o_ref:    (TM, TN)   output tile
    """
    x = x_ref[...].astype(jnp.float32)

    # Single-pass LayerNorm statistics. Padded lanes are zero so they do not
    # perturb the sums; divide by the TRUE feature dim, not the padded one.
    s1 = jnp.sum(x, axis=-1, keepdims=True)
    s2 = jnp.sum(x * x, axis=-1, keepdims=True)
    mean = s1 * inv_d
    var = s2 * inv_d - mean * mean
    inv = jax.lax.rsqrt(var + LN_EPS)

    gb = gb_ref[...].astype(jnp.float32)
    gamma = gb[0:1, :]
    beta = gb[1:2, :]
    y = (x - mean) * (inv * gamma) + beta

    # fn = Linear(D -> H) on the MXU: cast activations to the bf16 weight dtype
    # (do NOT upcast W), accumulate in f32.
    out = jnp.dot(y.astype(w_ref.dtype), w_ref[...],
                  preferred_element_type=jnp.float32)
    out = out + bias_ref[...].astype(jnp.float32)
    o_ref[...] = out.astype(o_ref.dtype)


def _vmem_capacity_bytes():
    try:
        cap = getattr(pltpu.get_tpu_info(), "vmem_capacity_bytes", None)
        if cap:
            return int(cap)
    except Exception:
        pass
    return 64 << 20  # conservative (v7x per-TensorCore VMEM)


def _spec(shape, index_map, constant):
    # Single-buffer operands whose block never changes across the grid.
    if constant:
        return pl.BlockSpec(shape, index_map, pipeline_mode=pl.Buffered(1))
    return pl.BlockSpec(shape, index_map)


def prenorm_linear(x, gamma, beta, w, bias, *, token_tile=512,
                   weight_dtype=jnp.bfloat16):
    """PreNorm forward: fn(LayerNorm(x)) with fn = Linear(D -> H).

    x: (B, N, D) -> (B, N, H); LayerNorm over the last dim.
    """
    B, N, D = x.shape
    Dw, H = w.shape
    assert Dw == D, "fn weight must consume the LayerNorm feature dim"
    M = B * N

    x2d = x.reshape(M, D)

    # ---- Tiling / padding decisions ----------------------------------------
    D_pad = _round_up(D, 128)            # lane-dense LN + aligned MXU K
    H_pad = _round_up(H, 128)            # lane-dense output (no vst.msk)

    # Token tile: large (amortize per-grid-step overhead; kernel is HBM-bound),
    # but guarantee >= 2 grid steps so both v7x TensorCores get work.
    tm = min(token_tile, _round_up(M, 8))
    tm = max(8, (tm // 8) * 8)
    if _round_up(M, tm) // tm < 2 and M > 8:
        tm = max(8, _round_up(_round_up(M, 8) // 2, 8))
    M_pad = _round_up(M, tm)

    # Stream W over H only when the bf16 weight would hog VMEM (v7x: 64 MiB).
    w_isz = jnp.dtype(weight_dtype).itemsize
    if D_pad * H_pad * w_isz > (8 << 20):
        tn = next(c for c in (512, 256, 128) if H_pad % c == 0)
    else:
        tn = H_pad
    n_h = H_pad // tn

    # ---- Operand preparation ------------------------------------------------
    if M_pad != M:
        x2d = jnp.pad(x2d, ((0, M_pad - M), (0, 0)))
    if D_pad != D:
        x2d = jnp.pad(x2d, ((0, 0), (0, D_pad - D)))

    w_p = w.astype(weight_dtype)                       # bf16 MXU path
    if D_pad != D or H_pad != H:
        w_p = jnp.pad(w_p, ((0, D_pad - D), (0, H_pad - H)))

    gamma_p = jnp.pad(gamma, (0, D_pad - D)) if D_pad != D else gamma
    beta_p = jnp.pad(beta, (0, D_pad - D)) if D_pad != D else beta
    gb = jnp.stack([gamma_p, beta_p]).astype(jnp.float32)       # (2, D_pad)

    bias_p = jnp.pad(bias, (0, H_pad - H)) if H_pad != H else bias
    bias2d = bias_p.astype(jnp.float32).reshape(1, H_pad)

    grid = (M_pad // tm, n_h)

    in_specs = [
        pl.BlockSpec((tm, D_pad), lambda i, j: (i, 0)),            # x tile
        _spec((2, D_pad), lambda i, j: (0, 0), constant=True),     # gamma/beta
        _spec((D_pad, tn), lambda i, j: (0, j), constant=(n_h == 1)),  # W
        _spec((1, tn), lambda i, j: (0, j), constant=(n_h == 1)),      # bias
    ]
    out_specs = pl.BlockSpec((tm, tn), lambda i, j: (i, j))

    # ---- Cost / VMEM hints ---------------------------------------------------
    x_isz = jnp.dtype(x2d.dtype).itemsize
    o_isz = jnp.dtype(x.dtype).itemsize
    cost = pl.CostEstimate(
        flops=2 * M_pad * D_pad * H_pad,
        transcendentals=M_pad,
        bytes_accessed=int(M_pad * D_pad * x_isz
                           + D_pad * H_pad * w_isz
                           + 2 * D_pad * 4 + H_pad * 4
                           + M_pad * H_pad * o_isz),
    )

    vmem_need = (
        2 * tm * D_pad * x_isz                                # x (double-buffered)
        + 2 * tm * tn * o_isz                                 # out (double-buffered)
        + (1 if n_h == 1 else 2) * D_pad * tn * w_isz         # W
        + 2 * D_pad * 4                                       # gamma/beta
        + (1 if n_h == 1 else 2) * tn * 4                     # bias
        + 6 * tm * max(D_pad, tn) * 4                         # f32 intermediates
    )
    vmem_cap = _vmem_capacity_bytes()
    vmem_limit = int(min(max(2 * vmem_need, 32 << 20), int(0.85 * vmem_cap)))

    kernel = functools.partial(prenorm_kernel, inv_d=1.0 / D)

    out2d = pl.pallas_call(
        kernel,
        out_shape=jax.ShapeDtypeStruct((M_pad, H_pad), x.dtype),
        grid_spec=pltpu.PrefetchScalarGridSpec(
            num_scalar_prefetch=0,
            grid=grid,
            in_specs=in_specs,
            out_specs=out_specs,
        ),
        compiler_params=pltpu.CompilerParams(
            dimension_semantics=("parallel", "parallel"),
            vmem_limit_bytes=vmem_limit,
        ),
        cost_estimate=cost,
    )(x2d, gb, w_p, bias2d)

    return out2d[:M, :H].reshape(B, N, H)


def prenorm_reference(x, gamma, beta, w, bias):
    """Pure-JAX reference matching the kernel's numeric path (bf16 matmul)."""
    xf = x.astype(jnp.float32)
    mean = jnp.mean(xf, axis=-1, keepdims=True)
    var = jnp.mean((xf - mean) ** 2, axis=-1, keepdims=True)
    y = (xf - mean) * jax.lax.rsqrt(var + LN_EPS) * gamma + beta
    yq = y.astype(jnp.bfloat16).astype(jnp.float32)
    wq = w.astype(jnp.bfloat16).astype(jnp.float32)
    return (yq @ wq + bias).astype(x.dtype)


# TODO(synk): PreNorm.fn is an arbitrary callable in the PyTorch module; this
# kernel fuses LayerNorm with the common MobileViT case fn = nn.Linear.  Other
# fn's would be applied outside the kernel on the LayerNorm output.

if __name__ == "__main__":
    B, N, D, H = 2, 8, 32, 64

    key = jax.random.PRNGKey(0)
    kx, kw, kb = jax.random.split(key, 3)

    x = jax.random.normal(kx, (B, N, D), dtype=jnp.float32)

    # nn.LayerNorm(dim) default init: weight=1, bias=0
    gamma = jnp.ones((D,), dtype=jnp.float32)
    beta = jnp.zeros((D,), dtype=jnp.float32)

    # fn = Linear(D, H): deterministic synthetic weights
    w = jax.random.normal(kw, (D, H), dtype=jnp.float32) * 0.05
    bias = jax.random.normal(kb, (H,), dtype=jnp.float32) * 0.05

    out = prenorm_linear(x, gamma, beta, w, bias)
    out = jax.block_until_ready(out)

    ref = prenorm_reference(x, gamma, beta, w, bias)
    np.testing.assert_allclose(np.asarray(out), np.asarray(ref),
                               rtol=2e-2, atol=2e-2)

    print("KERNEL_OK")
</pallas_src>

<mosaic_0001>
module attributes {stable_mosaic.version = 11 : i64} {
  func.func @prenorm_kernel(%arg0: i32, %arg1: i32, %arg2: memref<8x128xf32, #tpu.memory_space<vmem>>, %arg3: memref<2x128xf32, #tpu.memory_space<vmem>>, %arg4: memref<128x128xbf16, #tpu.memory_space<vmem>>, %arg5: memref<1x128xf32, #tpu.memory_space<vmem>>, %arg6: memref<8x128xf32, #tpu.memory_space<vmem>>) attributes {dimension_semantics = [#tpu.dimension_semantics<parallel>, #tpu.dimension_semantics<parallel>], iteration_bounds = array<i64: 2, 1>, scalar_prefetch = 0 : i64, scratch_operands = 0 : i64, tpu.core_type = #tpu.core_type<tc>, window_params = [{transform_indices = @transform_0, window_bounds = array<i64: 8, 128>}, {pipeline_mode = #tpu.pipeline_mode<synchronous>, transform_indices = @transform_1, window_bounds = array<i64: 2, 128>}, {pipeline_mode = #tpu.pipeline_mode<synchronous>, transform_indices = @transform_2, window_bounds = array<i64: 128, 128>}, {pipeline_mode = #tpu.pipeline_mode<synchronous>, transform_indices = @transform_3, window_bounds = array<i64: 1, 128>}, {transform_indices = @transform_4, window_bounds = array<i64: 8, 128>}]} {
    %c0 = arith.constant 0 : index
    %c0_0 = arith.constant 0 : index
    %0 = vector.load %arg2[%c0, %c0_0] : memref<8x128xf32, #tpu.memory_space<vmem>>, vector<8x128xf32>
    %cst = arith.constant dense<0.000000e+00> : vector<8xf32>
    %1 = vector.multi_reduction <add>, %0, %cst [1] : vector<8x128xf32> to vector<8xf32>
    %2 = vector.shape_cast %1 : vector<8xf32> to vector<8x1xf32>
    %3 = arith.mulf %0, %0 : vector<8x128xf32>
    %cst_1 = arith.constant dense<0.000000e+00> : vector<8xf32>
    %4 = vector.multi_reduction <add>, %3, %cst_1 [1] : vector<8x128xf32> to vector<8xf32>
    %5 = vector.shape_cast %4 : vector<8xf32> to vector<8x1xf32>
    %cst_2 = arith.constant 3.125000e-02 : f32
    %6 = vector.broadcast %cst_2 : f32 to vector<8x1xf32>
    %7 = arith.mulf %2, %6 : vector<8x1xf32>
    %cst_3 = arith.constant 3.125000e-02 : f32
    %8 = vector.broadcast %cst_3 : f32 to vector<8x1xf32>
    %9 = arith.mulf %5, %8 : vector<8x1xf32>
    %10 = arith.mulf %7, %7 : vector<8x1xf32>
    %11 = arith.subf %9, %10 : vector<8x1xf32>
    %cst_4 = arith.constant 9.99999974E-6 : f32
    %12 = vector.broadcast %cst_4 : f32 to vector<8x1xf32>
    %13 = arith.addf %11, %12 : vector<8x1xf32>
    %14 = math.rsqrt %13 : vector<8x1xf32>
    %c0_5 = arith.constant 0 : index
    %c0_6 = arith.constant 0 : index
    %15 = vector.load %arg3[%c0_5, %c0_6] : memref<2x128xf32, #tpu.memory_space<vmem>>, vector<2x128xf32>
    %16 = vector.extract_strided_slice %15 {offsets = [0, 0], sizes = [1, 128], strides = [1, 1]} : vector<2x128xf32> to vector<1x128xf32>
    %17 = vector.extract_strided_slice %15 {offsets = [1, 0], sizes = [1, 128], strides = [1, 1]} : vector<2x128xf32> to vector<1x128xf32>
    %18 = vector.broadcast %7 : vector<8x1xf32> to vector<8x128xf32>
    %19 = arith.subf %0, %18 : vector<8x128xf32>
    %20 = vector.broadcast %14 : vector<8x1xf32> to vector<8x128xf32>
    %21 = vector.broadcast %16 : vector<1x128xf32> to vector<8x128xf32>
    %22 = arith.mulf %20, %21 : vector<8x128xf32>
    %23 = arith.mulf %19, %22 : vector<8x128xf32>
    %24 = vector.broadcast %17 : vector<1x128xf32> to vector<8x128xf32>
    %25 = arith.addf %23, %24 : vector<8x128xf32>
    %26 = arith.truncf %25 : vector<8x128xf32> to vector<8x128xbf16>
    %c0_7 = arith.constant 0 : index
    %c0_8 = arith.constant 0 : index
    %27 = vector.load %arg4[%c0_7, %c0_8] : memref<128x128xbf16, #tpu.memory_space<vmem>>, vector<128x128xbf16>
    %cst_9 = arith.constant dense<0.000000e+00> : vector<8x128xf32>
    %28 = tpu.matmul %26, %27, %cst_9 {dimension_numbers = #tpu.dot_dimension_numbers<[1], [0], [0], [1], [0, 0, 1, 1], [], []>} : vector<8x128xbf16>, vector<128x128xbf16>, vector<8x128xf32> -> vector<8x128xf32>
    %c0_10 = arith.constant 0 : index
    %c0_11 = arith.constant 0 : index
    %29 = vector.load %arg5[%c0_10, %c0_11] : memref<1x128xf32, #tpu.memory_space<vmem>>, vector<1x128xf32>
    %30 = vector.broadcast %29 : vector<1x128xf32> to vector<8x128xf32>
    %31 = arith.addf %28, %30 : vector<8x128xf32>
    %c0_12 = arith.constant 0 : index
    %c0_13 = arith.constant 0 : index
    %32 = vector.load %arg6[%c0_12, %c0_13] : memref<8x128xf32, #tpu.memory_space<vmem>>, vector<8x128xf32>
    tpu.vector_store %arg6[%c0_12, %c0_13], %31 {strides = array<i32>} : memref<8x128xf32, #tpu.memory_space<vmem>>, vector<8x128xf32>,
    return
  }
  func.func @transform_0(%arg0: i32, %arg1: i32) -> (i32, i32) {
    %c0_i32 = arith.constant 0 : i32
    %c0_i32_0 = arith.constant 0 : i32
    return %arg0, %c0_i32 : i32, i32
  }
  func.func @transform_1(%arg0: i32, %arg1: i32) -> (i32, i32) {
    %c0_i32 = arith.constant 0 : i32
    %c0_i32_0 = arith.constant 0 : i32
    %c0_i32_1 = arith.constant 0 : i32
    return %c0_i32, %c0_i32_0 : i32, i32
  }
  func.func @transform_2(%arg0: i32, %arg1: i32) -> (i32, i32) {
    %c0_i32 = arith.constant 0 : i32
    %c0_i32_0 = arith.constant 0 : i32
    return %c0_i32, %arg1 : i32, i32
  }
  func.func @transform_3(%arg0: i32, %arg1: i32) -> (i32, i32) {
    %c0_i32 = arith.constant 0 : i32
    %c0_i32_0 = arith.constant 0 : i32
    return %c0_i32, %arg1 : i32, i32
  }
  func.func @transform_4(%arg0: i32, %arg1: i32) -> (i32, i32) {
    %c0_i32 = arith.constant 0 : i32
    return %arg0, %arg1 : i32, i32
  }
}

</mosaic_0001>

<bundles_post_ra>
// kernel: tpu_custom_call.1
= control target key start
LH: loop header
LB: loop body
LE: loop exit
PB: predicated region body
PF: predicated region fallthrough
CT: control target
= control target key end

     0   :  { %9 = vsyncpa [#allocation3], 0  ;;  %s1086_s0 = inlined_call_operand.hbm [shape: f32[16,128], index: 0, kind: input, shape index: {}]   ;;  %s1087_s1 = inlined_call_operand.hbm [shape: f32[2,128], index: 1, kind: input, shape index: {}]   ;;  %s1088_s2 = inlined_call_operand.hbm [shape: bf16[128,128], index: 2, kind: input, shape index: {}]   ;;  %s1089_s3 = inlined_call_operand.vmem [shape: f32[1,128], index: 3, kind: input, shape index: {}]   ;;  %s1090_s4 = inlined_call_operand.hbm [shape: f32[16,128], index: 4, kind: output, shape index: {}]  }
   0x1   :  { %11 = vsyncpa [#allocation3 + $0x1], 0 }
   0x2   :  { %12 = vsyncpa [#allocation6], 0 }
   0x3   :  { %13 = vsyncpa [#allocation4], 0 }
   0x4   :  { %15 = vsyncpa [#allocation4 + $0x1], 0  ;;  %s893_s15 = smov 0   ;;  %s895_s16 = smov 0  }
   0x5   :  { %s897_s17 = smov 0   ;;  %s899_s18 = smov 0  }
   0x6   :  { %s901_s19 = smov 0   ;;  %s903_s20 = smov 0  }
   0x7 LB: > { %s541_s21 = sadd.s32 4294967295, %s858_s20   ;;  %s542_s22 = sadd.s32 4294967294, %s858_s20   ;;  %s858_s20 = sphi %s903_s20, %s21_s20   ;;  %s854_s19 = sphi %s901_s19, %s1113_s19   ;;  %s850_s18 = sphi %s899_s18, %s1112_s18   ;;  %s846_s17 = sphi %s897_s17, %s1111_s17   ;;  %s842_s16 = sphi %s895_s16, %s1110_s16   ;;  %s838_s15 = sphi %s893_s15, %s1109_s15  }
   0x8   : > { %p53_p0 = scmp.ne.s32.totalorder %s842_s16, %s838_s15  ;;  %p927_p1 = scmp.eq.s32.totalorder %s541_s21, 0 }
   0x9   : > { %p931_p2 = scmp.eq.s32.totalorder %s541_s21, 1  ;;  %p158_p3 = scmp.eq.s32.totalorder %s542_s22, 1 }
   0xa   : > { %s1095_s23 = scalar_select %p927_p1, 1, 0 }
   0xb   : > { %s1096_s24 = scalar_select %p931_p2, 1, 0 }
   0xc   : > { %p937_p4 = por %p927_p1, %p53_p0  ;;  %p543_p5 = scmp.ge.s32.totalorder %s858_s20, 1 }
   0xd   : > { %p942_p6 = por %p158_p3, %p53_p0  ;;  %p165_p7 = scmp.lt.s32.totalorder %s858_s20, 3 }
   0xe   : > { %s1097_s25 = scalar_select %p937_p4, 1, 0 }
   0xf   : > { %s1098_s26 = scalar_select %p942_p6, 1, 0 }
  0x10   : > { %p947_p8 = pnand %p543_p5, %p165_p7  ;;  %s860_s28 = smov [#allocation5]  }
  0x11   : > { %s178_s29 = sshll.u32 %s860_s28, 4  ;;  %s861_s30 = smov [#allocation7]   ;;  %s179_s29 = int_to_ptr.vmem [resolvable:$true] %s178_s29 }
  0x12   : > { %s1099_s27 = scalar_select %p947_p8, 1, 0 }
  0x13   : > { %p609_p10 = pneg %p947_p8  ;;  %s190_s5 = sshll.u32 %s861_s30, 4  ;;  %s191_s5 = int_to_ptr.vmem [resolvable:$true] %s190_s5 }
  0x14   : > { %s705_s7 = scalar_lea.vmem %s179_s29, 32  ;;  %p713_p5 = scmp.lt.s32.totalorder %s179_s29, %s179_s29 }
  0x15   : > { %p956_p11 = pnand %p609_p10, %p927_p1  ;;  %p706_p13 = scmp.ne.s32.totalorder %s179_s29, %s705_s7 }
  0x16   : > { %p714_p7 = scmp.lt.s32.totalorder %s705_s7, %s705_s7 }
  0x17   : > { %p696_p12 = pneg %p956_p11 }
  0x18   : > { %p715_p9 = por %p714_p7, %p713_p5 }
  0x19   : > { %p708_p0 = pnand %p706_p13, %p696_p12 }
  0x1b   : > { %p709_p3 = pneg %p708_p0 }
  0x1d   : > { %p716_p6 = pnand %p715_p9, %p709_p3 }
  0x1f   : > { %719 = shalt.err (!%p716_p6)
}
  0x20   : > { %612 = dma.hbm_to_vmem [thread:$0]  (!%p956_p11), %s1087_s1, 32, %s179_s29, [#allocation6]  }
  0x21   : > { %s731_s10 = scalar_lea.vmem %s191_s5, 1024  ;;  %p739_p13 = scmp.lt.s32.totalorder %s191_s5, %s191_s5 }
  0x22   : > { %p732_p10 = scmp.ne.s32.totalorder %s191_s5, %s731_s10  ;;  %p740_p0 = scmp.lt.s32.totalorder %s731_s10, %s731_s10 }
  0x24   : > { %p734_p1 = pnand %p732_p10, %p696_p12  ;;  %p741_p8 = por %p740_p0, %p739_p13 }
  0x26   : > { %p735_p4 = pneg %p734_p1 }
  0x28   : > { %p742_p2 = pnand %p741_p8, %p735_p4 }
  0x2a   : > { %745 = shalt.err (!%p742_p2)
}
  0x2b   : > { %s862_s11 = smov 64   ;;  %s863_s12 = smov 4  }
  0x2c   : > { %615 = dma.hbm_to_vmem [thread:$0]  (!%p956_p11), %s1088_s2, 1024, %s191_s5, [#allocation6], %s862_s11, %s862_s11, %s863_s12  }
  0x2d   : > { %s33_s21 = sadd.s32 1, %s854_s19  ;;  %s40_s22 = sadd.s32 1, %s846_s17 }
  0x2e   : > { %p35_p1 = scmp.ge.s32.totalorder %s33_s21, 2  ;;  %p47_p2 = scmp.ne.s32.totalorder %s846_s17, %s842_s16 }
  0x2f   : > { %p48_p4 = scmp.eq.s32.totalorder %s858_s20, 0  ;;  %p626_p6 = scmp.lt.s32.totalorder %s858_s20, 2 }
  0x30   : > { %s1115_s21 = smov (%p35_p1, %s33_s21), 0  ;;  %p1101_p9 = scmp.ne.s32.totalorder %s1096_s24, 0 }
  0x31   : > { %p49_p8 = por %p48_p4, %p47_p2  ;;  %s37_s29 = ssub.s32 %s854_s19, %s1115_s21 }
  0x32   : > { %p988_p12 = por %p1101_p9, %p47_p2  ;;  %s210_s30 = sand.u32 1, %s846_s17  }
  0x33   : > { %p38_p3 = scmp.eq.s32.totalorder %s37_s29, 0  ;;  %s548_s5 = sshll.u32 %s210_s30, 3 }
  0x34   : > { %s549_s6 = sshll.u32 %s854_s19, 7  ;;  %s214_s11 = scalar_lea.vmem [#allocation2], %s548_s5 }
  0x35   : > { %s997_s7 = scalar_select %p38_p3, %s846_s17, %s40_s22  }
  0x36   : > { %s219_s10 = scalar_lea.hbm %s1086_s0, %s549_s6  ;;  %s221_s12 = sshll.u32 %s214_s11, 4  ;;  %s222_s12 = int_to_ptr.vmem [resolvable:$true] %s221_s12 }
  0x37   : > { %p1004_p11 = pnand %p626_p6, %p49_p8  ;;  %s211_s13 = scalar_lea.sflag [#allocation3], %s210_s30 }
  0x38   : > { %s759_s14 = scalar_lea.vmem %s222_s12, 128  ;;  %s864_s22 = smov [#allocation2]  }
  0x39   : > { %p748_p5 = pneg %p1004_p11  ;;  %p760_p7 = scmp.ne.s32.totalorder %s222_s12, %s759_s14 }
  0x3a   : > { %s764_s29 = sshll.u32 %s864_s22, 4  ;;  %s765_s29 = int_to_ptr.vmem [resolvable:$false] %s764_s29 }
  0x3b   : > { %p762_p10 = pnand %p760_p7, %p748_p5  ;;  %s766_s6 = scalar_lea.vmem %s765_s29, 256 }
  0x3c   : > { %p767_p0 = scmp.lt.s32.totalorder %s222_s12, %s765_s29  ;;  %p768_p1 = scmp.lt.s32.totalorder %s766_s6, %s759_s14 }
  0x3d   : > { %p763_p13 = pneg %p762_p10 }
  0x3e   : > { %p769_p2 = por %p768_p1, %p767_p0 }
  0x40   : > { %p770_p4 = pnand %p769_p2, %p763_p13 }
  0x42   : > { %773 = shalt.err (!%p770_p4)
}
  0x43   : > { %619 = dma.hbm_to_vmem [thread:$0]  (!%p1004_p11), %s219_s10, 128, %s222_s12, %s211_s13  }
  0x44   : > { %p1104_p6 = scmp.ne.s32.totalorder %s1099_s27, 0 }
  0x45   : > { %s1015_s30 = sand.u32 (!%p1104_p6), 1, %s842_s16   ;;  %p1105_p8 = scmp.ne.s32.totalorder (!%p1104_p6), %s1097_s25, 0 }
  0x46   : > { %230 = sbr.rel (%p1104_p6) target bundleno = 459 (0x1cb), region = 36  ;;  %s551_s5 = sshll.u32 (!%p1104_p6), %s1015_s30, 3 }
  0x47   : > { %s233_s8 = scalar_lea.sflag (!%p1104_p6), [#allocation3], %s1015_s30  ;;  %s236_s9 = scalar_lea.vmem (!%p1104_p6), [#allocation2], %s551_s5 }
  0x4b   : > { %825 = dma.done.wait (%p1105_p8), %s233_s8, 128  }
  0x4c   : > { %827 = vsyncadd (%p1105_p8), %s233_s8, 4294967168  ;;  %p1106_p9 = scmp.ne.s32.totalorder %s1095_s23, 0 }
  0x4e   : > { %829 = dma.done.wait (%p1106_p9), [#allocation6], 1056  }
  0x4f   : > { %831 = vsyncadd (%p1106_p9), [#allocation6], 4294966240  ;;  %v276_v0 = vld [vmem:[%s236_s9] sm:$0xff]  ;;  %v865_v3 = vmov 0.0   ;;  %v687_v6 = vld [vmem:[#allocation7 + $0x20] sm:$0xff]   ;;  %vm866_vm0 = vmmov 0   ;;  %v290_v18 = vlaneseq }
  0x50   : > { %277 = vadd.xlane.f32.xlu0 %v276_v0  ;;  %v279_v1 = vmul.f32 %v276_v0, %v276_v0  ;;  %v684_v2 = vld [vmem:[#allocation7 + $0x38] sm:$0xff]   ;;  %577 = vmatprep.subr.bf16.mxu0 %v865_v3  ;;  %v685_v4 = vld [vmem:[#allocation7 + $0x30] sm:$0xff]   ;;  %v686_v5 = vld [vmem:[#allocation7 + $0x28] sm:$0xff]   ;;  %s565_s27 = sshll.u32 %s850_s18, 7  ;;  %s271_s10 = scalar_lea.vmem [#allocation8], %s551_s5 }
  0x51   : > { %578 = vmatpush3.bf16.msra.mxu0 %v684_v2  ;;  %593 = vmatprep.mubr.msk.bf16.mxu0 %vm866_vm0, %v865_v3  ;;  %v688_v7 = vld [vmem:[#allocation7 + $0x18] sm:$0xff]   ;;  %v689_v8 = vld [vmem:[#allocation7 + $0x10] sm:$0xff]   ;;  %v690_v9 = vld [vmem:[#allocation7 + $0x8] sm:$0xff]   ;;  %v291_v19 = vshrl.u32 %v290_v18, 7  ;;  %s429_s11 = sshll.u32 %s271_s10, 4  ;;  %s1038_s13 = scalar_lea.hbm %s1090_s4, %s565_s27  ;;  %s1040_s11 = int_to_ptr.vmem [resolvable:$true] %s429_s11 }
  0x52   : > { %579 = vmatprep.subr.bf16.mxu0 %v865_v3  ;;  %v691_v10 = vld [vmem:[#allocation7] sm:$0xff]   ;;  %v288_v21 = vld [vmem:[#allocation5] sm:$0x3]  ;;  %v555_v31 = vld [vmem:[%s1089_s3] ss:$0 sm:$0xff]  ;;  %s415_s14 = scalar_lea.sflag [#allocation4], %s1015_s30 }
  0x53   : > { %v292_v20 = vsub.s32 0, %v291_v19  ;;  %v298_v23 = vsub.s32 1, %v291_v19  ;;  %s774_s18 = scalar_lea.vmem %s1040_s11, 128  ;;  %s867_s22 = smov [#allocation8]  }
  0x54   : > { %280 = vadd.xlane.f32.xlu0 %v279_v1  ;;  %p775_p3 = scmp.ne.s32.totalorder %s1040_s11, %s774_s18  ;;  %s778_s29 = sshll.u32 %s867_s22, 4  ;;  %s779_s29 = int_to_ptr.vmem [resolvable:$false] %s778_s29 }
  0x55   : > { %580 = vmatpush3.bf16.msra.mxu0 %v685_v4  ;;  %v293_v22 = vrot.slane %v288_v21, %v292_v20  ;;  %v299_v27 = vrot.slane %v288_v21, %v298_v23  ;;  %s780_s6 = scalar_lea.vmem %s779_s29, 256  ;;  %p781_p7 = scmp.lt.s32.totalorder %s1040_s11, %s779_s29 }
  0x56   : > { %581 = vmatprep.subr.bf16.mxu0 %v865_v3  ;;  %p776_p11 = pnand %p775_p3, %p988_p12  ;;  %p782_p10 = scmp.lt.s32.totalorder %s780_s6, %s774_s18 }
  0x58   : > { %p777_p5 = pneg %p776_p11  ;;  %p783_p13 = por %p782_p10, %p781_p7 }
  0x59   : > { %582 = vmatpush3.bf16.msra.mxu0 %v686_v5 }
  0x5a   : > { %583 = vmatprep.subr.bf16.mxu0 %v865_v3  ;;  %p784_p0 = pnand %p783_p13, %p777_p5 }
  0x5d   : > { %584 = vmatpush3.bf16.msra.mxu0 %v687_v6 }
  0x5e   : > { %585 = vmatprep.subr.bf16.mxu0 %v865_v3 }
  0x61   : > { %586 = vmatpush3.bf16.msra.mxu0 %v688_v7 }
  0x62   : > { %587 = vmatprep.subr.bf16.mxu0 %v865_v3 }
  0x65   : > { %588 = vmatpush3.bf16.msra.mxu0 %v689_v8 }
  0x66   : > { %589 = vmatprep.subr.bf16.mxu0 %v865_v3 }
  0x69   : > { %590 = vmatpush3.bf16.msra.mxu0 %v690_v9 }
  0x6a   : > { %591 = vmatprep.subr.bf16.mxu0 %v865_v3 }
  0x6d   : > { %592 = vmatpush3.bf16.msra.mxu0 %v691_v10 }
  0xd9   : > { %v278_v11 = vpop.xlane.xlu0 %277 }
  0xda   : > { %v282_v12 = vmul.f32 0.03125, %v278_v11 }
  0xdc   : > { %v284_v14 = vmul.f32 %v282_v12, %v282_v12  ;;  %v289_v25 = vsub.f32 %v276_v0, %v282_v12 }
  0xdd   : > { %v281_v13 = vpop.xlane.xlu0 %280 }
  0xde   : > { %v283_v15 = vmul.f32 0.03125, %v281_v13 }
  0xe0   : > { %v285_v16 = vsub.f32 %v283_v15, %v284_v14 }
  0xe2   : > { %v286_v17 = vadd.f32 1e-05, %v285_v16 }
  0xe4   : > { %692 = vrsqrt.f32 %v286_v17 }
  0xf1   : > { %v693_v24 = vpop.eup %692 }
  0xf2   : > { %v294_v26 = vmul.f32 %v693_v24, %v293_v22 }
  0xf4   : > { %v295_v28 = vmul.f32 %v294_v26, %v289_v25 }
  0xf6   : > { %v300_v29 = vadd.f32 %v299_v27, %v295_v28 }
  0xf8   : > { %v301_v30 = vpack.c.bf16 %v300_v29, %v300_v29 }
  0xfa   : > { %594 = vmatmul.mubr.bf16.vlgmr.msra.gmra.mxu0 %v301_v30 }
 0x1ba   : > { %v407_v32 = vpop.f32.mrf.mxu0 }
 0x1bb   : > { %v408_v33 = vadd.f32 %v555_v31, %v407_v32 }
 0x1bc   : > { %v595_v34 = vpop.f32.mrf.mxu0 }
 0x1bd   : > { %413 = vst [vmem:[%s271_s10] sm:$0xff] %v408_v33 }
 0x1be   : > { %v410_v35 = vpop.f32.mrf.mxu0 }
 0x1bf   : > { %787 = shalt.err (!%p784_p0)
}
 0x1c0   : > { %s788_s5 = scalar_lea.hbm %s1038_s13, 128  ;;  %s792_s9 = scalar_lea.hbm %s1090_s4, 256 }
 0x1c1   : > { %p789_p1 = scmp.ne.s32.totalorder %s1038_s13, %s788_s5  ;;  %p793_p6 = scmp.lt.s32.totalorder %s1038_s13, %s1090_s4 }
 0x1c2   : > { %p794_p8 = scmp.lt.s32.totalorder %s792_s9, %s788_s5 }
 0x1c3   : > { %p790_p2 = pnand %p789_p1, %p988_p12 }
 0x1c4   : > { %p795_p9 = por %p794_p8, %p793_p6 }
 0x1c5   : > { %p791_p4 = pneg %p790_p2 }
 0x1c7   : > { %p796_p3 = pnand %p795_p9, %p791_p4 }
 0x1c9   : > { %799 = shalt.err (!%p796_p3)
}
 0x1ca   : > { %607 = dma.vmem_to_hbm [thread:$0]  (%p988_p12), %s1040_s11, 128, %s1038_s13, %s415_s14   ;;  %v596_v36 = vpop.f32.mrf.mxu0 }
 0x1cb PF: > { %s441_s27 = sand.u32 1, %s838_s15   ;;  %p1107_p11 = scmp.ne.s32.totalorder %s1098_s26, 0 }
 0x1cc   : > { %p1108_p5 = scmp.ge.s32.totalorder %s858_s20, 2  ;;  %s442_s10 = scalar_lea.sflag [#allocation4], %s441_s27 }
 0x1ce   : > { %p621_p7 = pnand %p1108_p5, %p1107_p11 }
 0x1d0   : > { %p622_p10 = pneg %p621_p7 }
 0x1d2   : > { %833 = dma.done.wait (%p622_p10), %s442_s10, 128  }
 0x1d3   : > { %835 = vsyncadd (%p622_p10), %s442_s10, 4294967168  ;;  %s21_s20 = sadd.s32 1, %s858_s20   ;;  %s1109_s15 = smov %s842_s16 }
 0x1d4   : > { %p18_p13 = scmp.ge.s32.totalorder %s21_s20, 4   ;;  %s1110_s16 = smov %s846_s17 }
 0x1d5   : > { %s1111_s17 = smov %s997_s7  ;;  %s1112_s18 = smov %s854_s19 }
 0x1d6   : > { %s1113_s19 = smov %s1115_s21  ;;  %20 = sbr.rel (!%p18_p13) target bundleno = 7 (0x7), region = 93 }
 0x1db   :  { %447 = vsyncpa [#allocation3], 1 }
 0x1dc   :  { %449 = vsyncpa [#allocation3 + $0x1], 1 }
 0x1dd   :  { %450 = vsyncpa [#allocation6], 1 }
 0x1de   :  { %451 = vsyncpa [#allocation4], 1 }
 0x1df   :  { %453 = vsyncpa [#allocation4 + $0x1], 1 }

</bundles_post_ra>
